<compile_context>
chip_gen: v7x
topology: tpu7x:2x2x1
jax: 0.10.0
libtpu: 0.0.40
codegen_flags: <defaults>
</compile_context>

<pallas_src>
import functools

import jax
import jax.numpy as jnp
from jax.experimental import pallas as pl
from jax.experimental.pallas import tpu as pltpu


def _round_up(v, m):
    return ((v + m - 1) // m) * m


# ---------------------------------------------------------------------------
# Single-pass kernel: whole H*W row in VMEM, fused reduce + apply.
# ---------------------------------------------------------------------------
def _simam_kernel(x_ref, o_ref, *, hw, n, e_lambda):
    # x_ref/o_ref: (row_tile, hw) tile in VMEM; one row per channel.
    x = x_ref[...].astype(jnp.float32)

    mu = jnp.sum(x, axis=-1, keepdims=True) * (1.0 / hw)
    d = x - mu
    d2 = d * d
    s = jnp.sum(d2, axis=-1, keepdims=True)

    # sigmoid(t) == 0.5*tanh(t/2) + 0.5 with t = d^2/(4*(s/n+lam)) + 0.5
    #           == 0.5*tanh(d^2/(8*(s/n+lam)) + 0.25) + 0.5
    # -> single EUP transcendental, no per-element exp / divide.
    denom = 8.0 * (s * (1.0 / n) + e_lambda)
    r = pl.reciprocal(denom, approx=True)       # EUP slot
    r = r * (2.0 - denom * r)                   # one Newton step -> ~f32 accuracy
    y = d2 * r + 0.25
    attn = 0.5 * jnp.tanh(y) + 0.5              # EUP slot
    o_ref[...] = (x * attn).astype(o_ref.dtype)


# ---------------------------------------------------------------------------
# Lane-chunked fallback for very wide H*W: pass 1 accumulates per-row sum and
# sum-of-squares over lane chunks; pass 2 applies the attention per chunk.
# ---------------------------------------------------------------------------
def _stats_kernel(x_ref, sum_ref, ssq_ref, *, hw, chunk, masked):
    j = pl.program_id(1)

    @pl.when(j == 0)
    def _():
        sum_ref[...] = jnp.zeros_like(sum_ref)
        ssq_ref[...] = jnp.zeros_like(ssq_ref)

    x = x_ref[...].astype(jnp.float32)
    if masked:
        # Only the last lane chunk can be partial; mask its pad region.
        lane = jax.lax.broadcasted_iota(jnp.int32, x.shape, dimension=1)
        x = jnp.where(j * chunk + lane < hw, x, 0.0)
    sum_ref[...] += jnp.sum(x, axis=-1, keepdims=True)
    ssq_ref[...] += jnp.sum(x * x, axis=-1, keepdims=True)


def _apply_kernel(sum_ref, ssq_ref, x_ref, o_ref, *, hw, n, e_lambda):
    x = x_ref[...].astype(jnp.float32)
    sx = sum_ref[...]
    mu = sx * (1.0 / hw)
    s = jnp.maximum(ssq_ref[...] - sx * mu, 0.0)   # sum((x-mu)^2), guarded
    denom = 8.0 * (s * (1.0 / n) + e_lambda)
    r = pl.reciprocal(denom, approx=True)
    r = r * (2.0 - denom * r)
    d = x - mu
    y = d * d * r + 0.25
    o_ref[...] = (x * (0.5 * jnp.tanh(y) + 0.5)).astype(o_ref.dtype)


def _simam_chunked(x2d, rows, hw, n, e_lambda, lane_chunk, row_tile):
    grid = (pl.cdiv(rows, row_tile), pl.cdiv(hw, lane_chunk))
    masked = (hw % lane_chunk) != 0
    vmem = 48 << 20

    sum_x, ssq = pl.pallas_call(
        functools.partial(_stats_kernel, hw=hw, chunk=lane_chunk, masked=masked),
        out_shape=(jax.ShapeDtypeStruct((rows, 1), jnp.float32),
                   jax.ShapeDtypeStruct((rows, 1), jnp.float32)),
        grid_spec=pltpu.PrefetchScalarGridSpec(
            num_scalar_prefetch=0,
            grid=grid,
            in_specs=[pl.BlockSpec((row_tile, lane_chunk), lambda i, j: (i, j))],
            out_specs=[pl.BlockSpec((row_tile, 1), lambda i, j: (i, 0)),
                       pl.BlockSpec((row_tile, 1), lambda i, j: (i, 0))],
        ),
        compiler_params=pltpu.CompilerParams(
            dimension_semantics=("parallel", "arbitrary"),
            vmem_limit_bytes=vmem,
        ),
    )(x2d)

    out2d = pl.pallas_call(
        functools.partial(_apply_kernel, hw=hw, n=n, e_lambda=e_lambda),
        out_shape=jax.ShapeDtypeStruct((rows, hw), x2d.dtype),
        grid_spec=pltpu.PrefetchScalarGridSpec(
            num_scalar_prefetch=0,
            grid=grid,
            in_specs=[pl.BlockSpec((row_tile, 1), lambda i, j: (i, 0)),
                      pl.BlockSpec((row_tile, 1), lambda i, j: (i, 0)),
                      pl.BlockSpec((row_tile, lane_chunk), lambda i, j: (i, j))],
            out_specs=pl.BlockSpec((row_tile, lane_chunk), lambda i, j: (i, j)),
        ),
        compiler_params=pltpu.CompilerParams(
            dimension_semantics=("parallel", "parallel"),
            vmem_limit_bytes=vmem,
        ),
    )(sum_x, ssq, x2d)
    return out2d


def simam(x, e_lambda=1e-4, *, lane_chunk=4096, donate_input=False,
          _force_chunked=False):
    """SimAM forward. x: (B, C, H, W). Returns same shape/dtype."""
    b, c, h, w = x.shape
    hw = h * w
    n = float(max(hw - 1, 1))          # guard hw == 1
    rows = b * c
    x2d = x.reshape(rows, hw)          # free: row-major contiguous

    itemsize = jnp.dtype(x.dtype).itemsize
    # Minimum sublane tile: 8 for 4-byte, 16 for 2-byte, 32 for 1-byte dtypes.
    sub = {4: 8, 2: 16, 1: 32}.get(itemsize, 8)

    # VMEM estimate for the single-pass kernel at the minimum row tile:
    # 4 pipelined tile buffers (in+out, double-buffered, x.dtype) + ~3 f32 temps.
    min_rows = min(rows, sub)
    est_min = min_rows * hw * (4 * itemsize + 3 * 4)
    use_chunked = (_force_chunked or est_min > (40 << 20)) and hw > lane_chunk

    # Row tile: ~4 MiB of f32 per tile-sized temp, capped so grid stays >= ~4
    # (pipelining + megacore sharding), floored at the sublane tile.
    target_elems = 1 << 20
    cols = lane_chunk if use_chunked else hw
    if rows <= sub:
        row_tile = rows                               # full extent, always legal
    else:
        row_budget = max(sub, (target_elems // cols) // sub * sub)
        row_cap = _round_up(pl.cdiv(rows, 4), sub)    # keep grid >= ~4
        row_tile = max(sub, min(row_budget, row_cap))

    if use_chunked:
        out2d = _simam_chunked(x2d, rows, hw, n, float(e_lambda),
                               lane_chunk, row_tile)
        return out2d.reshape(b, c, h, w)

    grid = pl.cdiv(rows, row_tile)
    out2d = pl.pallas_call(
        functools.partial(_simam_kernel, hw=hw, n=n, e_lambda=float(e_lambda)),
        out_shape=jax.ShapeDtypeStruct((rows, hw), x.dtype),
        grid_spec=pltpu.PrefetchScalarGridSpec(
            num_scalar_prefetch=0,
            grid=(grid,),
            in_specs=[pl.BlockSpec((row_tile, hw), lambda i: (i, 0))],
            out_specs=pl.BlockSpec((row_tile, hw), lambda i: (i, 0)),
        ),
        compiler_params=pltpu.CompilerParams(
            dimension_semantics=("parallel",),
            vmem_limit_bytes=48 << 20,
        ),
        # Only alias when the caller actually donates x (otherwise XLA would
        # insert a defensive copy and negate the saving).
        input_output_aliases={0: 0} if donate_input else {},
    )(x2d)
    return out2d.reshape(b, c, h, w)


def simam_reference(x, e_lambda=1e-4):
    # Pure-JAX reference mirroring the PyTorch simam_module.forward.
    b, c, h, w = x.shape
    n = w * h - 1
    xf = x.astype(jnp.float32)
    mu = jnp.mean(xf, axis=(2, 3), keepdims=True)
    d2 = (xf - mu) ** 2
    y = d2 / (4.0 * (jnp.sum(d2, axis=(2, 3), keepdims=True) / n + e_lambda)) + 0.5
    return (xf * jax.nn.sigmoid(y)).astype(x.dtype)


# TODO(synk): the rest of DCNet_L1 (deform_down/deform_up deformable convs,
# unetConv2/unetUp conv+BN+ReLU stacks, maxpools, transposed convs, final 1x1
# conv) is standard convolution machinery best left to XLA; only the SimAM
# attention op is implemented as a custom Pallas kernel here.


if __name__ == "__main__":
    key = jax.random.PRNGKey(0)

    # Main case: small NCHW feature map, single-pass path, no padding anywhere.
    x = jax.random.normal(key, (2, 4, 16, 16), dtype=jnp.float32)
    out = jax.block_until_ready(simam(x))
    ref = simam_reference(x)
    assert out.shape == x.shape and out.dtype == x.dtype
    assert jnp.allclose(out, ref, atol=1e-5, rtol=1e-5), (
        f"f32 max err {jnp.max(jnp.abs(out - ref))}"
    )

    # Non-aligned case: H*W = 100 (not a multiple of 128), rows = 3 (< sublane 8).
    x_pad = jax.random.normal(jax.random.PRNGKey(0), (1, 3, 10, 10), dtype=jnp.float32)
    out_pad = jax.block_until_ready(simam(x_pad))
    ref_pad = simam_reference(x_pad)
    assert out_pad.shape == x_pad.shape
    assert jnp.allclose(out_pad, ref_pad, atol=1e-5, rtol=1e-5), (
        f"odd-shape max err {jnp.max(jnp.abs(out_pad - ref_pad))}"
    )

    # bf16 passthrough: halves HBM traffic; internal math stays f32.
    x_bf = x.astype(jnp.bfloat16)
    out_bf = jax.block_until_ready(simam(x_bf))
    ref_bf = simam_reference(x_bf)
    assert out_bf.dtype == jnp.bfloat16
    assert jnp.allclose(
        out_bf.astype(jnp.float32), ref_bf.astype(jnp.float32), atol=2e-2, rtol=2e-2
    ), "bf16 mismatch"

    # Lane-chunked fallback path (forced): exact chunk divide.
    x_ck = jax.random.normal(jax.random.PRNGKey(0), (1, 2, 32, 64), dtype=jnp.float32)
    out_ck = jax.block_until_ready(
        simam(x_ck, lane_chunk=512, _force_chunked=True))
    ref_ck = simam_reference(x_ck)
    assert jnp.allclose(out_ck, ref_ck, atol=1e-4, rtol=1e-4), (
        f"chunked max err {jnp.max(jnp.abs(out_ck - ref_ck))}"
    )

    # Lane-chunked fallback path (forced): partial last chunk (3200 % 512 != 0).
    x_ck2 = jax.random.normal(jax.random.PRNGKey(0), (1, 3, 40, 80), dtype=jnp.float32)
    out_ck2 = jax.block_until_ready(
        simam(x_ck2, lane_chunk=512, _force_chunked=True))
    ref_ck2 = simam_reference(x_ck2)
    assert jnp.allclose(out_ck2, ref_ck2, atol=1e-4, rtol=1e-4), (
        f"chunked-partial max err {jnp.max(jnp.abs(out_ck2 - ref_ck2))}"
    )

    print("KERNEL_OK")
</pallas_src>

<mosaic_0001>
module attributes {stable_mosaic.version = 11 : i64} {
  func.func @_simam_kernel(%arg0: i32, %arg1: memref<8x256xf32, #tpu.memory_space<vmem>>, %arg2: memref<8x256xf32, #tpu.memory_space<vmem>>) attributes {dimension_semantics = [#tpu.dimension_semantics<parallel>], iteration_bounds = array<i64: 1>, scalar_prefetch = 0 : i64, scratch_operands = 0 : i64, tpu.core_type = #tpu.core_type<tc>, window_params = [{transform_indices = @transform_0, window_bounds = array<i64: 8, 256>}, {transform_indices = @transform_1, window_bounds = array<i64: 8, 256>}]} {
    %c0 = arith.constant 0 : index
    %c0_0 = arith.constant 0 : index
    %0 = vector.load %arg1[%c0, %c0_0] : memref<8x256xf32, #tpu.memory_space<vmem>>, vector<8x256xf32>
    %cst = arith.constant dense<0.000000e+00> : vector<8xf32>
    %1 = vector.multi_reduction <add>, %0, %cst [1] : vector<8x256xf32> to vector<8xf32>
    %2 = vector.shape_cast %1 : vector<8xf32> to vector<8x1xf32>
    %cst_1 = arith.constant 3.906250e-03 : f32
    %3 = vector.broadcast %cst_1 : f32 to vector<8x1xf32>
    %4 = arith.mulf %2, %3 : vector<8x1xf32>
    %5 = vector.broadcast %4 : vector<8x1xf32> to vector<8x256xf32>
    %6 = arith.subf %0, %5 : vector<8x256xf32>
    %7 = arith.mulf %6, %6 : vector<8x256xf32>
    %cst_2 = arith.constant dense<0.000000e+00> : vector<8xf32>
    %8 = vector.multi_reduction <add>, %7, %cst_2 [1] : vector<8x256xf32> to vector<8xf32>
    %9 = vector.shape_cast %8 : vector<8xf32> to vector<8x1xf32>
    %cst_3 = arith.constant 0.00392156886 : f32
    %10 = vector.broadcast %cst_3 : f32 to vector<8x1xf32>
    %11 = arith.mulf %9, %10 : vector<8x1xf32>
    %cst_4 = arith.constant 9.99999974E-5 : f32
    %12 = vector.broadcast %cst_4 : f32 to vector<8x1xf32>
    %13 = arith.addf %11, %12 : vector<8x1xf32>
    %cst_5 = arith.constant 8.000000e+00 : f32
    %14 = vector.broadcast %cst_5 : f32 to vector<8x1xf32>
    %15 = arith.mulf %14, %13 : vector<8x1xf32>
    %16 = tpu.reciprocal %15 {approx = true} : vector<8x1xf32> -> vector<8x1xf32>
    %17 = arith.mulf %15, %16 : vector<8x1xf32>
    %cst_6 = arith.constant 2.000000e+00 : f32
    %18 = vector.broadcast %cst_6 : f32 to vector<8x1xf32>
    %19 = arith.subf %18, %17 : vector<8x1xf32>
    %20 = arith.mulf %16, %19 : vector<8x1xf32>
    %21 = vector.broadcast %20 : vector<8x1xf32> to vector<8x256xf32>
    %22 = arith.mulf %7, %21 : vector<8x256xf32>
    %cst_7 = arith.constant 2.500000e-01 : f32
    %23 = vector.broadcast %cst_7 : f32 to vector<8x256xf32>
    %24 = arith.addf %22, %23 : vector<8x256xf32>
    %25 = math.tanh %24 : vector<8x256xf32>
    %cst_8 = arith.constant 5.000000e-01 : f32
    %26 = vector.broadcast %cst_8 : f32 to vector<8x256xf32>
    %27 = arith.mulf %26, %25 : vector<8x256xf32>
    %cst_9 = arith.constant 5.000000e-01 : f32
    %28 = vector.broadcast %cst_9 : f32 to vector<8x256xf32>
    %29 = arith.addf %27, %28 : vector<8x256xf32>
    %30 = arith.mulf %0, %29 : vector<8x256xf32>
    %c0_10 = arith.constant 0 : index
    %c0_11 = arith.constant 0 : index
    %31 = vector.load %arg2[%c0_10, %c0_11] : memref<8x256xf32, #tpu.memory_space<vmem>>, vector<8x256xf32>
    tpu.vector_store %arg2[%c0_10, %c0_11], %30 {strides = array<i32>} : memref<8x256xf32, #tpu.memory_space<vmem>>, vector<8x256xf32>,
    return
  }
  func.func @transform_0(%arg0: i32) -> (i32, i32) {
    %c0_i32 = arith.constant 0 : i32
    %c0_i32_0 = arith.constant 0 : i32
    return %arg0, %c0_i32 : i32, i32
  }
  func.func @transform_1(%arg0: i32) -> (i32, i32) {
    %c0_i32 = arith.constant 0 : i32
    %c0_i32_0 = arith.constant 0 : i32
    return %arg0, %c0_i32 : i32, i32
  }
}

</mosaic_0001>

<bundles_post_ra>
// kernel: tpu_custom_call.1
= control target key start
LH: loop header
LB: loop body
LE: loop exit
PB: predicated region body
PF: predicated region fallthrough
CT: control target
= control target key end

     0   :  { %6 = vsyncpa [#allocation3], 0  ;;  %s162_s0 = inlined_call_operand.hbm [shape: f32[8,256], index: 0, kind: input, shape index: {}]   ;;  %s163_s1 = inlined_call_operand.hbm [shape: f32[8,256], index: 1, kind: output, shape index: {}]  }
   0x1   :  { %7 = vsyncpa [#allocation4], 0  ;;  %s126_s6 = smov [#allocation2]   ;;  %s78_s10 = scalar_lea.hbm %s162_s0, 256 }
   0x2   :  { %s14_s7 = sshll.u32 %s126_s6, 4  ;;  %p79_p0 = scmp.ne.s32.totalorder %s162_s0, %s78_s10  ;;  %s15_s7 = int_to_ptr.vmem [resolvable:$true] %s14_s7 }
   0x3   :  { %p82_p1 = scmp.lt.u32.totalorder %s78_s10, %s162_s0 }
   0x5   :  { %p84_p2 = pnand %p82_p1, %p79_p0 }
   0x7   :  { %87 = shalt.err (!%p84_p2)
}
   0x8   :  { %s88_s15 = scalar_lea.vmem %s15_s7, 256  ;;  %p93_p4 = scmp.lt.s32.totalorder %s15_s7, %s15_s7 }
   0x9   :  { %p89_p3 = scmp.ne.s32.totalorder %s15_s7, %s88_s15  ;;  %p94_p5 = scmp.lt.s32.totalorder %s88_s15, %s88_s15 }
   0xb   :  { %p95_p6 = por %p94_p5, %p93_p4 }
   0xd   :  { %p96_p7 = pnand %p95_p6, %p89_p3 }
   0xf   :  { %99 = shalt.err (!%p96_p7)
}
  0x10   :  { %17 = dma.hbm_to_vmem [thread:$0]  %s162_s0, 256, %s15_s7, [#allocation3]  }
  0x11   :  { %122 = dma.done.wait [#allocation3], 256  }
  0x12   :  { %123 = vsyncadd [#allocation3], 4294967040  ;;  %v21_v0 = vld [vmem:[#allocation2] sm:$0xff]  ;;  %v22_v1 = vld [vmem:[#allocation2 + $0x8] sm:$0xff]  ;;  %s127_s0 = smov [#allocation5]  }
  0x13   :  { %v23_v2 = vadd.f32 %v22_v1, %v21_v0  ;;  %s61_s18 = sshll.u32 %s127_s0, 4  ;;  %s62_s18 = int_to_ptr.vmem [resolvable:$true] %s61_s18 }
  0x14   :  { %s100_s19 = scalar_lea.vmem %s62_s18, 256  ;;  %p105_p9 = scmp.lt.s32.totalorder %s62_s18, %s62_s18 }
  0x15   :  { %24 = vadd.xlane.f32.xlu0 %v23_v2  ;;  %p101_p8 = scmp.ne.s32.totalorder %s62_s18, %s100_s19  ;;  %p106_p10 = scmp.lt.s32.totalorder %s100_s19, %s100_s19 }
  0x17   :  { %p107_p11 = por %p106_p10, %p105_p9 }
  0x19   :  { %p108_p12 = pnand %p107_p11, %p101_p8 }
  0xa2   :  { %v25_v3 = vpop.xlane.xlu0 %24 }
  0xa3   :  { %v26_v4 = vmul.f32 0.00390625, %v25_v3 }
  0xa5   :  { %v27_v5 = vsub.f32 %v21_v0, %v26_v4  ;;  %v28_v6 = vsub.f32 %v22_v1, %v26_v4 }
  0xa7   :  { %v29_v7 = vmul.f32 %v27_v5, %v27_v5  ;;  %v30_v8 = vmul.f32 %v28_v6, %v28_v6 }
  0xa9   :  { %v31_v9 = vadd.f32 %v30_v8, %v29_v7 }
  0xab   :  { %32 = vadd.xlane.f32.xlu0 %v31_v9 }
 0x138   :  { %v33_v10 = vpop.xlane.xlu0 %32 }
 0x139   :  { %v34_v11 = vmul.f32 0.003921569, %v33_v10 }
 0x13b   :  { %v35_v12 = vadd.f32 0.0001, %v34_v11 }
 0x13d   :  { %v36_v13 = vmul.f32 8.0, %v35_v12 }
 0x13f   :  { %72 = vrcp.f32 %v36_v13 }
 0x149   :  { %v73_v14 = vpop.eup %72 }
 0x14a   :  { %v38_v15 = vmul.f32 %v73_v14, %v36_v13 }
 0x14c   :  { %v39_v16 = vsub.f32 2.0, %v38_v15 }
 0x14e   :  { %v40_v17 = vmul.f32 %v73_v14, %v39_v16 }
 0x150   :  { %v41_v18 = vmul.f32 %v40_v17, %v29_v7  ;;  %v42_v19 = vmul.f32 %v40_v17, %v30_v8 }
 0x152   :  { %v43_v20 = vadd.f32 0.25, %v41_v18  ;;  %v44_v21 = vadd.f32 0.25, %v42_v19 }
 0x154   :  { %74 = vtanh.f32 %v43_v20 }
 0x155   :  { %76 = vtanh.f32 %v44_v21 }
 0x15e   :  { %v75_v22 = vpop.eup %74 }
 0x15f   :  { %v77_v23 = vpop.eup %76  ;;  %v47_v24 = vmul.f32 0.5, %v75_v22 }
 0x160   :  { %v48_v25 = vmul.f32 0.5, %v77_v23 }
 0x161   :  { %v49_v26 = vadd.f32 0.5, %v47_v24 }
 0x162   :  { %v50_v27 = vadd.f32 0.5, %v48_v25 }
 0x163   :  { %v51_v28 = vmul.f32 %v49_v26, %v21_v0 }
 0x164   :  { %v52_v29 = vmul.f32 %v50_v27, %v22_v1 }
 0x165   :  { %53 = vst [vmem:[#allocation5] sm:$0xff] %v51_v28 }
 0x166   :  { %54 = vst [vmem:[#allocation5 + $0x8] sm:$0xff] %v52_v29 }
 0x167   :  { %111 = shalt.err (!%p108_p12)
}
 0x168   :  { %s112_s22 = scalar_lea.hbm %s163_s1, 256 }
 0x169   :  { %p113_p13 = scmp.ne.s32.totalorder %s163_s1, %s112_s22  ;;  %p116_p0 = scmp.lt.u32.totalorder %s112_s22, %s163_s1 }
 0x16b   :  { %p118_p1 = pnand %p116_p0, %p113_p13 }
 0x16d   :  { %121 = shalt.err (!%p118_p1)
}
 0x16e   :  { %64 = dma.vmem_to_hbm [thread:$0]  %s62_s18, 256, %s163_s1, [#allocation4]  }
 0x16f   :  { %124 = dma.done.wait [#allocation4], 256  }
 0x170   :  { %125 = vsyncadd [#allocation4], 4294967040 }
 0x171   :  { %68 = vsyncpa [#allocation3], 1 }
 0x172   :  { %69 = vsyncpa [#allocation4], 1 }

</bundles_post_ra>
